<compile_context>
chip_gen: v5e
topology: v5e:2x2
jax: 0.10.0
libtpu: 0.0.40
codegen_flags: <defaults>
</compile_context>

<pallas_src>
import jax
import jax.numpy as jnp
from jax.experimental import pallas as pl
from jax.experimental.pallas import tpu as pltpu

IN_FEATURES = 330
OUT_FEATURES = 62
MAX_TB = 1024        # batch-tile cap (multiple of 8), VMEM-safe on all chips


def _round_up(n, m):
    return ((n + m - 1) // m) * m


def _choose_tb(B):
    """Batch tile: >= 4 grid steps for large B, multiple of 8, <= MAX_TB."""
    quarter = -(-B // 4)                      # ceil(B / 4)
    tb = _round_up(max(quarter, 8), 8)
    return min(MAX_TB, tb)


def linear_kernel(x_ref, wt_ref, b_ref, o_ref):
    # (TB, 330) @ (330, 62) on the MXU, f32 accumulate, bias add on the VPU.
    acc = jnp.dot(x_ref[...], wt_ref[...],
                  preferred_element_type=jnp.float32,
                  precision=jax.lax.Precision.HIGHEST)
    o_ref[...] = (acc + b_ref[...]).astype(o_ref.dtype)


def prepare_params(weight, bias):
    """One-time param prep: weight (62, 330) -> (330, 62); bias -> (1, 62)."""
    return weight.T.astype(jnp.float32), bias.reshape(1, -1).astype(jnp.float32)


def dumb_model_forward(x, wt, b2d):
    """x: (B, 330) f32; wt: (330, 62); b2d: (1, 62) -> (B, 62)."""
    B = x.shape[0]
    TB = _choose_tb(B)
    grid = (pl.cdiv(B, TB),)        # remainder handled by edge-clamped DMA

    return pl.pallas_call(
        linear_kernel,
        out_shape=jax.ShapeDtypeStruct((B, OUT_FEATURES), x.dtype),
        grid_spec=pltpu.PrefetchScalarGridSpec(
            num_scalar_prefetch=0,
            grid=grid,
            in_specs=[
                # x streams over B tiles (double-buffered by BlockSpec).
                pl.BlockSpec((TB, IN_FEATURES), lambda i: (i, 0)),
                # Weight and bias stay resident across the whole grid.
                pl.BlockSpec((IN_FEATURES, OUT_FEATURES), lambda i: (0, 0)),
                pl.BlockSpec((1, OUT_FEATURES), lambda i: (0, 0)),
            ],
            out_specs=pl.BlockSpec((TB, OUT_FEATURES), lambda i: (i, 0)),
        ),
        compiler_params=pltpu.CompilerParams(
            # Independent B tiles: shard across v7x's 2 TensorCores.
            dimension_semantics=("parallel",)),
    )(x, wt, b2d)


def init_params(key):
    # nn.Linear(330, 62)-shaped params: weight (62, 330), bias (62,),
    # uniform(-1/sqrt(in), 1/sqrt(in)) like PyTorch.
    kw, kb = jax.random.split(key)
    bound = 1.0 / jnp.sqrt(jnp.float32(IN_FEATURES))
    weight = jax.random.uniform(kw, (OUT_FEATURES, IN_FEATURES),
                                jnp.float32, -bound, bound)
    bias = jax.random.uniform(kb, (OUT_FEATURES,), jnp.float32, -bound, bound)
    return weight, bias


if __name__ == "__main__":
    key = jax.random.PRNGKey(0)
    kx, kp, kx2 = jax.random.split(key, 3)

    weight, bias = init_params(kp)
    wt, b2d = prepare_params(weight, bias)    # once, not per call

    def ref_fwd(x):
        return jnp.dot(x, weight.T, precision=jax.lax.Precision.HIGHEST) + bias

    # Small-batch path (B = 8): single grid step, exact tile.
    B = 8
    x = jax.random.normal(kx, (B, IN_FEATURES), jnp.float32)
    y = dumb_model_forward(x, wt, b2d)
    jax.block_until_ready(y)
    assert y.shape == (B, OUT_FEATURES)
    assert jnp.allclose(y, ref_fwd(x), atol=1e-4, rtol=1e-4)

    # Larger-batch path: multi-step grid + ragged final tile (no jnp.pad,
    # no wrapper slice -- edge handling is done by the Pallas pipeliner).
    B2 = 2000
    x2 = jax.random.normal(kx2, (B2, IN_FEATURES), jnp.float32)
    y2 = dumb_model_forward(x2, wt, b2d)
    jax.block_until_ready(y2)
    assert y2.shape == (B2, OUT_FEATURES)
    assert jnp.allclose(y2, ref_fwd(x2), atol=1e-4, rtol=1e-4)

    print("KERNEL_OK")
</pallas_src>

<mosaic_0001>
module attributes {stable_mosaic.version = 11 : i64} {
  func.func @linear_kernel(%arg0: i32, %arg1: memref<8x330xf32, #tpu.memory_space<vmem>>, %arg2: memref<330x62xf32, #tpu.memory_space<vmem>>, %arg3: memref<1x62xf32, #tpu.memory_space<vmem>>, %arg4: memref<8x62xf32, #tpu.memory_space<vmem>>) attributes {dimension_semantics = [#tpu.dimension_semantics<parallel>], iteration_bounds = array<i64: 1>, scalar_prefetch = 0 : i64, scratch_operands = 0 : i64, tpu.core_type = #tpu.core_type<tc>, window_params = [{transform_indices = @transform_0, window_bounds = array<i64: 8, 330>}, {pipeline_mode = #tpu.pipeline_mode<synchronous>, transform_indices = @transform_1, window_bounds = array<i64: 330, 62>}, {pipeline_mode = #tpu.pipeline_mode<synchronous>, transform_indices = @transform_2, window_bounds = array<i64: 1, 62>}, {transform_indices = @transform_3, window_bounds = array<i64: 8, 62>}]} {
    %c0 = arith.constant 0 : index
    %c0_0 = arith.constant 0 : index
    %0 = vector.load %arg1[%c0, %c0_0] : memref<8x330xf32, #tpu.memory_space<vmem>>, vector<8x330xf32>
    %c0_1 = arith.constant 0 : index
    %c0_2 = arith.constant 0 : index
    %1 = vector.load %arg2[%c0_1, %c0_2] : memref<330x62xf32, #tpu.memory_space<vmem>>, vector<330x62xf32>
    %cst = arith.constant dense<0.000000e+00> : vector<8x62xf32>
    %2 = tpu.matmul %0, %1, %cst {dimension_numbers = #tpu.dot_dimension_numbers<[1], [0], [0], [1], [0, 0, 1, 1], [], []>, precision = #tpu.contract_precision<fp32>} : vector<8x330xf32>, vector<330x62xf32>, vector<8x62xf32> -> vector<8x62xf32>
    %c0_3 = arith.constant 0 : index
    %c0_4 = arith.constant 0 : index
    %3 = vector.load %arg3[%c0_3, %c0_4] : memref<1x62xf32, #tpu.memory_space<vmem>>, vector<1x62xf32>
    %4 = vector.broadcast %3 : vector<1x62xf32> to vector<8x62xf32>
    %5 = arith.addf %2, %4 : vector<8x62xf32>
    %c0_5 = arith.constant 0 : index
    %c0_6 = arith.constant 0 : index
    %6 = vector.load %arg4[%c0_5, %c0_6] : memref<8x62xf32, #tpu.memory_space<vmem>>, vector<8x62xf32>
    tpu.vector_store %arg4[%c0_5, %c0_6], %5 {strides = array<i32>} : memref<8x62xf32, #tpu.memory_space<vmem>>, vector<8x62xf32>,
    return
  }
  func.func @transform_0(%arg0: i32) -> (i32, i32) {
    %c0_i32 = arith.constant 0 : i32
    %c0_i32_0 = arith.constant 0 : i32
    return %arg0, %c0_i32 : i32, i32
  }
  func.func @transform_1(%arg0: i32) -> (i32, i32) {
    %c0_i32 = arith.constant 0 : i32
    %c0_i32_0 = arith.constant 0 : i32
    %c0_i32_1 = arith.constant 0 : i32
    return %c0_i32, %c0_i32_0 : i32, i32
  }
  func.func @transform_2(%arg0: i32) -> (i32, i32) {
    %c0_i32 = arith.constant 0 : i32
    %c0_i32_0 = arith.constant 0 : i32
    %c0_i32_1 = arith.constant 0 : i32
    return %c0_i32, %c0_i32_0 : i32, i32
  }
  func.func @transform_3(%arg0: i32) -> (i32, i32) {
    %c0_i32 = arith.constant 0 : i32
    %c0_i32_0 = arith.constant 0 : i32
    return %arg0, %c0_i32 : i32, i32
  }
}

</mosaic_0001>

<bundles_post_ra>
// kernel: tpu_custom_call.1
= control target key start
LH: loop header
LB: loop body
LE: loop exit
PB: predicated region body
PF: predicated region fallthrough
CT: control target
= control target key end

     0   :  { %s1871_s0 = inlined_call_operand.vmem [shape: f32[8,330], index: 0, kind: input, shape index: {}]   ;;  %s1872_s1 = inlined_call_operand.vmem [shape: f32[330,62], index: 1, kind: input, shape index: {}]   ;;  %s1873_s2 = inlined_call_operand.vmem [shape: f32[1,62], index: 2, kind: input, shape index: {}]   ;;  %s1874_s3 = inlined_call_operand.hbm [shape: f32[8,62], index: 3, kind: output, shape index: {}]  }
   0x1   :  { %v33_v0 = vld [vmem:[%s1872_s1 + $0x78] sm:$0xff]  ;;  %v32_v1 = vld [vmem:[%s1872_s1 + $0x70] sm:$0xff]  ;;  %v31_v2 = vld [vmem:[%s1872_s1 + $0x68] sm:$0xff] }
   0x2   :  { %v1093_v3 = vand.u32 4294901760, %v33_v0  ;;  %v1095_v4 = vand.u32 4294901760, %v32_v1  ;;  %v1097_v5 = vand.u32 4294901760, %v31_v2  ;;  %v30_v6 = vld [vmem:[%s1872_s1 + $0x60] sm:$0xff]  ;;  %v29_v7 = vld [vmem:[%s1872_s1 + $0x58] sm:$0xff]  ;;  %v28_v8 = vld [vmem:[%s1872_s1 + $0x50] sm:$0xff] }
   0x3   :  { %v1108_v9 = vand.u32 4294901760, %v30_v6  ;;  %v1110_v10 = vand.u32 4294901760, %v29_v7  ;;  %v1112_v11 = vand.u32 4294901760, %v28_v8  ;;  %v27_v12 = vld [vmem:[%s1872_s1 + $0x48] sm:$0xff]  ;;  %v26_v13 = vld [vmem:[%s1872_s1 + $0x40] sm:$0xff]  ;;  %v25_v21 = vld [vmem:[%s1872_s1 + $0x38] sm:$0xff] }
   0x4   :  { %73 = vmatpush.msra.mxu0 %v1093_v3  ;;  %v1122_v14 = vsub.f32 %v33_v0, %v1093_v3  ;;  %v1125_v15 = vsub.f32 %v32_v1, %v1095_v4  ;;  %269 = vmatpush.msra.mxu3 %v1093_v3  ;;  %v1129_v16 = vsub.f32 %v31_v2, %v1097_v5  ;;  %v1131_v17 = vand.u32 4294901760, %v27_v12  ;;  %v24_v26 = vld [vmem:[%s1872_s1 + $0x30] sm:$0xff]  ;;  %v23_v36 = vld [vmem:[%s1872_s1 + $0x28] sm:$0xff] }
   0x5   :  { %v1134_v18 = vsub.f32 %v30_v6, %v1108_v9  ;;  %v1137_v19 = vsub.f32 %v29_v7, %v1110_v10  ;;  %v1140_v20 = vsub.f32 %v28_v8, %v1112_v11  ;;  %v1150_v25 = vand.u32 4294901760, %v26_v13 }
   0x6   :  { %75 = vmatpush.msra.mxu0 %v1095_v4  ;;  %216 = vmatpush.msra.mxu2 %v1122_v14  ;;  %v115_v22 = vand.u32 4294901760, %v1122_v14  ;;  %v1890_v23 = vand.u32 4294901760, %v1125_v15  ;;  %v1888_v24 = vand.u32 4294901760, %v1129_v16  ;;  %v1159_v29 = vsub.f32 %v27_v12, %v1131_v17 }
   0x7   :  { %271 = vmatpush.msra.mxu3 %v1095_v4  ;;  %v1887_v27 = vand.u32 4294901760, %v1134_v18  ;;  %v1884_v28 = vand.u32 4294901760, %v1137_v19  ;;  %v1172_v33 = vand.u32 4294901760, %v25_v21  ;;  %v1175_v34 = vand.u32 4294901760, %v24_v26 }
   0x8   :  { %77 = vmatpush.msra.mxu0 %v1097_v5  ;;  %219 = vmatpush.msra.mxu2 %v1125_v15  ;;  %v116_v30 = vsub.f32 %v1122_v14, %v115_v22  ;;  %v122_v31 = vsub.f32 %v1125_v15, %v1890_v23  ;;  %v128_v32 = vsub.f32 %v1129_v16, %v1888_v24  ;;  %v1882_v35 = vand.u32 4294901760, %v1140_v20 }
   0x9   :  { %273 = vmatpush.msra.mxu3 %v1097_v5 }
   0xa   :  { %8 = vsyncpa [#allocation3], 0  ;;  %79 = vmatpush.msra.mxu0 %v1108_v9  ;;  %v117_v37 = vand.u32 4294901760, %v116_v30  ;;  %222 = vmatpush.msra.mxu2 %v1129_v16  ;;  %v123_v38 = vand.u32 4294901760, %v122_v31  ;;  %v134_v39 = vsub.f32 %v1134_v18, %v1887_v27  ;;  %v1187_v40 = vsub.f32 %v26_v13, %v1150_v25  ;;  %v22_v42 = vld [vmem:[%s1872_s1 + $0x20] sm:$0xff]  ;;  %v21_v47 = vld [vmem:[%s1872_s1 + $0x18] sm:$0xff] }
   0xb   :  { %275 = vmatpush.msra.mxu3 %v1108_v9  ;;  %v140_v41 = vsub.f32 %v1137_v19, %v1884_v28  ;;  %v129_v43 = vand.u32 4294901760, %v128_v32  ;;  %v1197_v44 = vand.u32 4294901760, %v23_v36  ;;  %v1881_v45 = vand.u32 4294901760, %v1159_v29  ;;  %v20_v54 = vld [vmem:[%s1872_s1 + $0x10] sm:$0xff]  ;;  %v49_v59 = vld [vmem:[%s1872_s1 + $0xf8] sm:$0xff]  ;;  %v19_v61 = vld [vmem:[%s1872_s1 + $0x8] sm:$0xff] }
   0xc   :  { %81 = vmatpush.msra.mxu0 %v1110_v10  ;;  %118 = vmatpush.msra.mxu1 %v117_v37  ;;  %v1201_v46 = vsub.f32 %v25_v21, %v1172_v33  ;;  %v146_v48 = vsub.f32 %v1140_v20, %v1882_v35  ;;  %v135_v49 = vand.u32 4294901760, %v134_v39  ;;  %v1212_v50 = vand.u32 4294901760, %v22_v42  ;;  %v18_v2 = vld [vmem:[%s1872_s1] sm:$0xff]  ;;  %v48_v6 = vld [vmem:[%s1872_s1 + $0xf0] sm:$0xff]  ;;  %v47_v32 = vld [vmem:[%s1872_s1 + $0xe8] sm:$0xff]  ;;  %s1026_s24 = sshll.u32 %s1874_s3, 4  ;;  %s1027_s24 = int_to_ptr.hbm [resolvable:$true] %s1026_s24 }
   0xd   :  { %225 = vmatpush.msra.mxu2 %v1134_v18  ;;  %277 = vmatpush.msra.mxu3 %v1110_v10  ;;  %v1880_v51 = vand.u32 4294901760, %v1187_v40  ;;  %v1216_v52 = vsub.f32 %v24_v26, %v1175_v34  ;;  %v1220_v53 = vand.u32 4294901760, %v21_v47  ;;  %v141_v55 = vand.u32 4294901760, %v140_v41 }
   0xe   :  { %83 = vmatpush.msra.mxu0 %v1112_v11  ;;  %124 = vmatpush.msra.mxu1 %v123_v38  ;;  %v152_v56 = vsub.f32 %v1159_v29, %v1881_v45  ;;  %v1879_v57 = vand.u32 4294901760, %v1201_v46  ;;  %v1231_v58 = vsub.f32 %v23_v36, %v1197_v44  ;;  %v147_v60 = vand.u32 4294901760, %v146_v48  ;;  %v42_v45 = vld [vmem:[%s1872_s1 + $0xc0] sm:$0xff] }
   0xf   :  { %228 = vmatpush.msra.mxu2 %v1137_v19  ;;  %279 = vmatpush.msra.mxu3 %v1112_v11  ;;  %v158_v62 = vsub.f32 %v1187_v40, %v1880_v51  ;;  %v1245_v63 = vand.u32 4294901760, %v20_v54  ;;  %v1878_v0 = vand.u32 4294901760, %v1216_v52  ;;  %v1249_v1 = vsub.f32 %v22_v42, %v1212_v50 }
  0x10   :  { %85 = vmatpush.msra.mxu0 %v1131_v17  ;;  %130 = vmatpush.msra.mxu1 %v129_v43  ;;  %v1260_v7 = vsub.f32 %v21_v47, %v1220_v53  ;;  %v1262_v8 = vand.u32 4294901760, %v49_v59  ;;  %v153_v12 = vand.u32 4294901760, %v152_v56  ;;  %v164_v13 = vsub.f32 %v1201_v46, %v1879_v57  ;;  %v46_v43 = vld [vmem:[%s1872_s1 + $0xe0] sm:$0xff] }
  0x11   :  { %231 = vmatpush.msra.mxu2 %v1140_v20  ;;  %281 = vmatpush.msra.mxu3 %v1131_v17  ;;  %v1268_v21 = vand.u32 4294901760, %v19_v61  ;;  %v1876_v26 = vand.u32 4294901760, %v1231_v58  ;;  %v1273_v30 = vand.u32 4294901760, %v18_v2  ;;  %v1275_v31 = vand.u32 4294901760, %v48_v6 }
  0x12   :  { %87 = vmatpush.msra.mxu0 %v1150_v25  ;;  %136 = vmatpush.msra.mxu1 %v135_v49  ;;  %v159_v36 = vand.u32 4294901760, %v158_v62  ;;  %v170_v37 = vsub.f32 %v1216_v52, %v1878_v0  ;;  %v1875_v38 = vand.u32 4294901760, %v1249_v1  ;;  %v1286_v39 = vsub.f32 %v20_v54, %v1245_v63 }
  0x13   :  { %234 = vmatpush.msra.mxu2 %v1159_v29  ;;  %283 = vmatpush.msra.mxu3 %v1150_v25  ;;  %v1877_v41 = vand.u32 4294901760, %v1260_v7  ;;  %v1292_v42 = vsub.f32 %v49_v59, %v1262_v8  ;;  %v165_v47 = vand.u32 4294901760, %v164_v13  ;;  %v176_v48 = vsub.f32 %v1231_v58, %v1876_v26  ;;  %v45_v59 = vld [vmem:[%s1872_s1 + $0xd8] sm:$0xff]  ;;  %v44_v13 = vld [vmem:[%s1872_s1 + $0xd0] sm:$0xff] }
  0x14   :  { %89 = vmatpush.msra.mxu0 %v1172_v33  ;;  %142 = vmatpush.msra.mxu1 %v141_v55  ;;  %v1302_v49 = vsub.f32 %v19_v61, %v1268_v21  ;;  %v1304_v54 = vand.u32 4294901760, %v47_v32  ;;  %v1309_v55 = vsub.f32 %v18_v2, %v1273_v30  ;;  %v1312_v56 = vsub.f32 %v48_v6, %v1275_v31 }
  0x15   :  { %237 = vmatpush.msra.mxu2 %v1187_v40  ;;  %285 = vmatpush.msra.mxu3 %v1172_v33  ;;  %v182_v61 = vsub.f32 %v1249_v1, %v1875_v38  ;;  %v1883_v62 = vand.u32 4294901760, %v1286_v39  ;;  %v188_v2 = vsub.f32 %v1260_v7, %v1877_v41  ;;  %v1885_v6 = vand.u32 4294901760, %v1292_v42 }
  0x16   :  { %91 = vmatpush.msra.mxu0 %v1175_v34  ;;  %148 = vmatpush.msra.mxu1 %v147_v60  ;;  %v171_v60 = vand.u32 4294901760, %v170_v37  ;;  %v1886_v37 = vand.u32 4294901760, %v1302_v49  ;;  %v1336_v38 = vsub.f32 %v47_v32, %v1304_v54  ;;  %v1338_v26 = vand.u32 4294901760, %v45_v59 }
  0x17   :  { %240 = vmatpush.msra.mxu2 %v1201_v46  ;;  %287 = vmatpush.msra.mxu3 %v1175_v34  ;;  %v1891_v41 = vand.u32 4294901760, %v1309_v55  ;;  %v1889_v0 = vand.u32 4294901760, %v1312_v56  ;;  %v194_v32 = vsub.f32 %v1286_v39, %v1883_v62  ;;  %v1354_v51 = vand.u32 4294901760, %v44_v13 }
  0x18   :  { %93 = vmatpush.msra.mxu0 %v1197_v44  ;;  %154 = vmatpush.msra.mxu1 %v153_v12  ;;  %v1322_v12 = vand.u32 4294901760, %v46_v43  ;;  %v189_v35 = vand.u32 4294901760, %v188_v2  ;;  %v1370_v62 = vsub.f32 %v45_v59, %v1338_v26  ;;  %v41_v2 = vld [vmem:[%s1872_s1 + $0xb8] sm:$0xff]  ;;  %vm68_vm0 = vcmask 1041408  }
  0x19   :  { %243 = vmatpush.msra.mxu2 %v1216_v52  ;;  %289 = vmatpush.msra.mxu3 %v1197_v44  ;;  %v195_v59 = vand.u32 4294901760, %v194_v32  ;;  %v1390_v24 = vsub.f32 %v44_v13, %v1354_v51  ;;  %v1395_v23 = vand.u32 4294901760, %v41_v2  ;;  %vm64_vm1 = vcmask 605184  }
  0x1a   :  { %95 = vmatpush.msra.mxu0 %v1212_v50  ;;  %160 = vmatpush.msra.mxu1 %v159_v36  ;;  %v177_v36 = vand.u32 4294901760, %v176_v48  ;;  %v183_v48 = vand.u32 4294901760, %v182_v61  ;;  %v1352_v57 = vsub.f32 %v46_v43, %v1322_v12  ;;  %v200_v43 = vsub.f32 %v1302_v49, %v1886_v37 }
  0x1b   :  { %246 = vmatpush.msra.mxu2 %v1231_v58  ;;  %291 = vmatpush.msra.mxu3 %v1212_v50  ;;  %v1892_v61 = vand.u32 4294901760, %v1336_v38  ;;  %v206_v37 = vsub.f32 %v1309_v55, %v1891_v41  ;;  %v1894_v14 = vand.u32 4294901760, %v1370_v62  ;;  %vm1017_vm2 = vcmask 506880  }
  0x1c   :  { %97 = vmatpush.msra.mxu0 %v1220_v53  ;;  %166 = vmatpush.msra.mxu1 %v165_v47  ;;  %v43_v47 = vld [vmem:[%s1872_s1 + $0xc8] sm:$0xff]  ;;  %v1893_v27 = vand.u32 4294901760, %v1352_v57  ;;  %v201_v32 = vand.u32 4294901760, %v200_v43 }
  0x1d   :  { %249 = vmatpush.msra.mxu2 %v1249_v1  ;;  %293 = vmatpush.msra.mxu3 %v1220_v53  ;;  %v1372_v28 = vand.u32 4294901760, %v43_v47  ;;  %v469_v13 = vsub.f32 %v1336_v38, %v1892_v61  ;;  %v39_v43 = vld [vmem:[%s1872_s1 + $0xa8] sm:$0xff]  ;;  %v207_v61 = vand.u32 4294901760, %v206_v37 }
  0x1e   :  { %99 = vmatpush.msra.mxu0 %v1245_v63  ;;  %172 = vmatpush.msra.mxu1 %v171_v60  ;;  %v457_v60 = vsub.f32 %v1292_v42, %v1885_v6  ;;  %v1382_v6 = vand.u32 4294901760, %v42_v45 }
  0x1f   :  { %252 = vmatpush.msra.mxu2 %v1260_v7  ;;  %295 = vmatpush.msra.mxu3 %v1245_v63  ;;  %v470_v37 = vand.u32 4294901760, %v469_v13 }
  0x20   :  { %101 = vmatpush.msra.mxu0 %v1268_v21  ;;  %178 = vmatpush.msra.mxu1 %v177_v36  ;;  %v463_v36 = vsub.f32 %v1312_v56, %v1889_v0  ;;  %v458_v0 = vand.u32 4294901760, %v457_v60  ;;  %v1895_v60 = vand.u32 4294901760, %v1125_v15 }
  0x21   :  { %255 = vmatpush.msra.mxu2 %v1286_v39  ;;  %297 = vmatpush.msra.mxu3 %v1268_v21 }
  0x22   :  { %103 = vmatpush.msra.mxu0 %v1273_v30  ;;  %184 = vmatpush.msra.mxu1 %v183_v48  ;;  %v40_v48 = vld [vmem:[%s1872_s1 + $0xb0] sm:$0xff]  ;;  %v464_v41 = vand.u32 4294901760, %v463_v36  ;;  %v1896_v36 = vand.u32 4294901760, %v1129_v16  ;;  %v1437_v16 = vand.u32 4294901760, %v39_v43 }
  0x23   :  { %258 = vmatpush.msra.mxu2 %v1302_v49  ;;  %299 = vmatpush.msra.mxu3 %v1273_v30 }
  0x24   :  { %310 = vmatpush.msrb.mxu0 %v115_v22  ;;  %190 = vmatpush.msra.mxu1 %v189_v35  ;;  %v1406_v22 = vsub.f32 %v43_v47, %v1372_v28  ;;  %v1412_v35 = vsub.f32 %v42_v45, %v1382_v6  ;;  %v475_v47 = vsub.f32 %v1352_v57, %v1893_v27 }
  0x25   :  { %261 = vmatpush.msra.mxu2 %v1309_v55  ;;  %459 = vmatpush.msrb.mxu3 %v458_v0  ;;  %v1427_v45 = vsub.f32 %v41_v2, %v1395_v23  ;;  %v481_v27 = vsub.f32 %v1370_v62, %v1894_v14  ;;  %v1897_v0 = vand.u32 4294901760, %v1134_v18  ;;  %v1466_v2 = vsub.f32 %v39_v43, %v1437_v16 }
  0x26   :  { %314 = vmatpush.msrb.mxu0 %v1895_v60  ;;  %196 = vmatpush.msra.mxu1 %v195_v59  ;;  %v1422_v60 = vand.u32 4294901760, %v40_v48  ;;  %v38_v59 = vld [vmem:[%s1872_s1 + $0xa0] sm:$0xff]  ;;  %v476_v13 = vand.u32 4294901760, %v475_v47 }
  0x27   :  { %414 = vmatpush.msrb.mxu2 %v1262_v8  ;;  %465 = vmatpush.msrb.mxu3 %v464_v41  ;;  %v1452_v18 = vand.u32 4294901760, %v38_v59  ;;  %v1899_v41 = vand.u32 4294901760, %v1137_v19  ;;  %v482_v47 = vand.u32 4294901760, %v481_v27  ;;  %v36_v27 = vld [vmem:[%s1872_s1 + $0x90] sm:$0xff] }
  0x28   :  { %318 = vmatpush.msrb.mxu0 %v1896_v36  ;;  %202 = vmatpush.msra.mxu1 %v201_v32  ;;  %v37_v32 = vld [vmem:[%s1872_s1 + $0x98] sm:$0xff]  ;;  %v1898_v36 = vand.u32 4294901760, %v1390_v24  ;;  %v1450_v15 = vsub.f32 %v40_v48, %v1422_v60  ;;  %v1900_v48 = vand.u32 4294901760, %v1406_v22 }
  0x29   :  { %416 = vmatpush.msrb.mxu2 %v1275_v31  ;;  %471 = vmatpush.msrb.mxu3 %v470_v37  ;;  %v1468_v19 = vand.u32 4294901760, %v37_v32  ;;  %v1497_v37 = vand.u32 4294901760, %v36_v27 }
  0x2a   :  { %322 = vmatpush.msrb.mxu0 %v1897_v0  ;;  %208 = vmatpush.msra.mxu1 %v207_v61  ;;  %v487_v14 = vsub.f32 %v1390_v24, %v1898_v36  ;;  %v15_v61 = vld [vmem:[%s1871_s0] sm:$0xff]  ;;  %v493_v36 = vsub.f32 %v1406_v22, %v1900_v48  ;;  %v1482_v48 = vsub.f32 %v38_v59, %v1452_v18 }
  0x2b   :  { %418 = vmatpush.msrb.mxu2 %v1304_v54  ;;  %477 = vmatpush.msrb.mxu3 %v476_v13 }
  0x2c   :  { %326 = vmatpush.msrb.mxu0 %v1899_v41  ;;  %377 = vmatpush.msrb.mxu1 %v1093_v3  ;;  %v1901_v3 = vand.u32 4294901760, %v1140_v20  ;;  %v1902_v41 = vand.u32 4294901760, %v1412_v35  ;;  %v488_v43 = vand.u32 4294901760, %v487_v14  ;;  %v1484_v20 = vand.u32 4294901760, %v15_v61  ;;  %v35_v14 = vld [vmem:[%s1872_s1 + $0x88] sm:$0xff] }
  0x2d   :  { %420 = vmatpush.msrb.mxu2 %v1322_v12  ;;  %483 = vmatpush.msrb.mxu3 %v482_v47  ;;  %v494_v59 = vand.u32 4294901760, %v493_v36  ;;  %v1906_v47 = vand.u32 4294901760, %v1450_v15 }
  0x2e   :  { %330 = vmatpush.msrb.mxu0 %v1901_v3  ;;  %379 = vmatpush.msrb.mxu1 %v1095_v4  ;;  %v499_v0 = vsub.f32 %v1412_v35, %v1902_v41  ;;  %v1903_v4 = vand.u32 4294901760, %v1159_v29  ;;  %v1904_v3 = vand.u32 4294901760, %v1427_v45  ;;  %v1500_v29 = vsub.f32 %v37_v32, %v1468_v19 }
  0x2f   :  { %422 = vmatpush.msrb.mxu2 %v1338_v26  ;;  %489 = vmatpush.msrb.mxu3 %v488_v43  ;;  %v511_v36 = vsub.f32 %v1450_v15, %v1906_v47  ;;  %v1514_v13 = vsub.f32 %v15_v61, %v1484_v20  ;;  %v1908_v43 = vand.u32 4294901760, %v1466_v2  ;;  %v1527_v61 = vsub.f32 %v36_v27, %v1497_v37 }
  0x30   :  { %334 = vmatpush.msrb.mxu0 %v1903_v4  ;;  %381 = vmatpush.msrb.mxu1 %v1097_v5  ;;  %v505_v41 = vsub.f32 %v1427_v45, %v1904_v3  ;;  %v1905_v5 = vand.u32 4294901760, %v1187_v40  ;;  %v500_v4 = vand.u32 4294901760, %v499_v0  ;;  %v34_v3 = vld [vmem:[%s1872_s1 + $0x80] sm:$0xff]  ;;  %v1516_v40 = vand.u32 4294901760, %v35_v14 }
  0x31   :  { %424 = vmatpush.msrb.mxu2 %v1354_v51  ;;  %495 = vmatpush.msrb.mxu3 %v494_v59  ;;  %v528_v47 = vand.u32 4294901760, %v1500_v29  ;;  %v1529_v32 = vand.u32 4294901760, %v34_v3 }
  0x32   :  { %338 = vmatpush.msrb.mxu0 %v1905_v5  ;;  %383 = vmatpush.msrb.mxu1 %v1108_v9  ;;  %v1907_v9 = vand.u32 4294901760, %v1201_v46  ;;  %v506_v0 = vand.u32 4294901760, %v505_v41  ;;  %v517_v5 = vsub.f32 %v1466_v2, %v1908_v43  ;;  %v1909_v46 = vand.u32 4294901760, %v1216_v52 }
  0x33   :  { %426 = vmatpush.msrb.mxu2 %v1372_v28  ;;  %501 = vmatpush.msrb.mxu3 %v500_v4  ;;  %v1910_v41 = vand.u32 4294901760, %v1482_v48  ;;  %v1540_v27 = vsub.f32 %v35_v14, %v1516_v40  ;;  %v1911_v43 = vand.u32 4294901760, %v1231_v58  ;;  %v529_v52 = vsub.f32 %v1500_v29, %v528_v47 }
  0x34   :  { %342 = vmatpush.msrb.mxu0 %v1907_v9  ;;  %385 = vmatpush.msrb.mxu1 %v1110_v10  ;;  %v512_v10 = vand.u32 4294901760, %v511_v36  ;;  %v106_v9 = vand.u32 4294901760, %v1514_v13  ;;  %v534_v4 = vand.u32 4294901760, %v1527_v61  ;;  %v1551_v36 = vsub.f32 %v34_v3, %v1529_v32 }
  0x35   :  { %428 = vmatpush.msrb.mxu2 %v1382_v6  ;;  %v523_v59 = vsub.f32 %v1482_v48, %v1910_v41  ;;  %507 = vmatpush.msrb.mxu3 %v506_v0  ;;  %v1912_v14 = vand.u32 4294901760, %v1249_v1  ;;  %v1913_v3 = vand.u32 4294901760, %v1260_v7  ;;  %v1914_v41 = vand.u32 4294901760, %v1286_v39 }
  0x36   :  { %346 = vmatpush.msrb.mxu0 %v1909_v46  ;;  %387 = vmatpush.msrb.mxu1 %v1112_v11  ;;  %v518_v11 = vand.u32 4294901760, %v517_v5  ;;  %v107_v0 = vsub.f32 %v1514_v13, %v106_v9  ;;  %v540_v5 = vand.u32 4294901760, %v1540_v27  ;;  %v535_v1 = vsub.f32 %v1527_v61, %v534_v4 }
  0x37   :  { %430 = vmatpush.msrb.mxu2 %v1395_v23  ;;  %513 = vmatpush.msrb.mxu3 %v512_v10  ;;  %v524_v58 = vand.u32 4294901760, %v523_v59  ;;  %v546_v46 = vand.u32 4294901760, %v1551_v36  ;;  %v1915_v59 = vand.u32 4294901760, %v1302_v49 }
  0x38   :  { %350 = vmatpush.msrb.mxu0 %v1911_v43  ;;  %389 = vmatpush.msrb.mxu1 %v1131_v17  ;;  %v16_v17 = vld [vmem:[%s1871_s0 + $0x8] sm:$0xff]  ;;  %v541_v7 = vsub.f32 %v1540_v27, %v540_v5  ;;  %v536_v39 = vand.u32 4294901760, %v535_v1 }
  0x39   :  { %432 = vmatpush.msrb.mxu2 %v1422_v60  ;;  %519 = vmatpush.msrb.mxu3 %v518_v11  ;;  %v1570_v10 = vand.u32 4294901760, %v16_v17  ;;  %v1916_v11 = vand.u32 4294901760, %v1309_v55  ;;  %v1920_v55 = vand.u32 4294901760, %v1352_v57 }
  0x3a   :  { %354 = vmatpush.msrb.mxu0 %v1912_v14  ;;  %391 = vmatpush.msrb.mxu1 %v1150_v25  ;;  %v530_v25 = vand.u32 4294901760, %v529_v52 }
  0x3b   :  { %434 = vmatpush.msrb.mxu2 %v1437_v16  ;;  %525 = vmatpush.msrb.mxu3 %v524_v58  ;;  %v1587_v43 = vsub.f32 %v16_v17, %v1570_v10  ;;  %v51_v58 = vld [vmem:[%s1872_s1 + $0x108] sm:$0xff] }
  0x3c   :  { %358 = vmatpush.msrb.mxu0 %v1913_v3  ;;  %393 = vmatpush.msrb.mxu1 %v1172_v33  ;;  %v108_v33 = vand.u32 4294901760, %v107_v0 }
  0x3d   :  { %436 = vmatpush.msrb.mxu2 %v1452_v18  ;;  %531 = vmatpush.msrb.mxu3 %v530_v25  ;;  %v447_v52 = vand.u32 4294901760, %v1587_v43 }
  0x3e   :  { %362 = vmatpush.msrb.mxu0 %v1914_v41  ;;  %395 = vmatpush.msrb.mxu1 %v1175_v34  ;;  %v547_v34 = vsub.f32 %v1551_v36, %v546_v46  ;;  %v1776_v41 = vand.u32 4294901760, %v51_v58 }
  0x3f   :  { %438 = vmatpush.msrb.mxu2 %v1468_v19  ;;  %109 = vmatmul.f32.vlgmr.msra.gmra.mxu0 %v108_v33 }
  0x40   :  { %366 = vmatpush.msrb.mxu0 %v1915_v59  ;;  %397 = vmatpush.msrb.mxu1 %v1197_v44  ;;  %v542_v44 = vand.u32 4294901760, %v541_v7  ;;  %v548_v49 = vand.u32 4294901760, %v547_v34  ;;  %v50_v7 = vld [vmem:[%s1872_s1 + $0x100] sm:$0xff] }
  0x41   :  { %440 = vmatpush.msrb.mxu2 %v1497_v37  ;;  %537 = vmatpush.msrb.mxu3 %v536_v39 }
  0x42   :  { %370 = vmatpush.msrb.mxu0 %v1916_v11  ;;  %399 = vmatpush.msrb.mxu1 %v1212_v50  ;;  %v1917_v50 = vand.u32 4294901760, %v1292_v42  ;;  %v1799_v11 = vand.u32 4294901760, %v50_v7 }
  0x43   :  { %442 = vmatpush.msrb.mxu2 %v1516_v40  ;;  %543 = vmatpush.msrb.mxu3 %v542_v44 }
  0x44   :  { %557 = vmatpush.msra.mxu0 %v1292_v42  ;;  %401 = vmatpush.msrb.mxu1 %v1220_v53  ;;  %v448_v53 = vsub.f32 %v1587_v43, %v447_v52 }
  0x45   :  { %444 = vmatpush.msrb.mxu2 %v1529_v32  ;;  %549 = vmatpush.msrb.mxu3 %v548_v49 }
  0x46   :  { %560 = vmatpush.msra.mxu0 %v1312_v56  ;;  %403 = vmatpush.msrb.mxu1 %v1245_v63  ;;  %v1918_v63 = vand.u32 4294901760, %v1312_v56  ;;  %v449_v42 = vand.u32 4294901760, %v448_v53  ;;  %v1926_v56 = vand.u32 4294901760, %v1450_v15  ;;  %v1808_v53 = vsub.f32 %v51_v58, %v1776_v41 }
  0x47   :  { %264 = vmatmul.f32.vlgmr.msra.gmra.mxu2 %v1514_v13  ;;  %303 = vmatmul.f32.vlgmr.msra.gmra.mxu3 %v106_v9 }
  0x48   :  { %563 = vmatpush.msra.mxu0 %v1336_v38  ;;  %651 = vmatpush.msra.mxu2 %v1917_v50 }
  0x49   :  { %405 = vmatpush.msrb.mxu1 %v1268_v21  ;;  %718 = vmatpush.msra.mxu3 %v1262_v8  ;;  %v1919_v21 = vand.u32 4294901760, %v1336_v38  ;;  %v1925_v38 = vand.u32 4294901760, %v1427_v45 }
  0x4a   :  { %566 = vmatpush.msra.mxu0 %v1352_v57  ;;  %655 = vmatpush.msra.mxu2 %v1918_v63  ;;  %v1922_v57 = vand.u32 4294901760, %v1390_v24 }
  0x4b   :  { %407 = vmatpush.msrb.mxu1 %v1273_v30  ;;  %720 = vmatpush.msra.mxu3 %v1275_v31  ;;  %v1921_v30 = vand.u32 4294901760, %v1370_v62 }
  0x4c   :  { %569 = vmatpush.msra.mxu0 %v1370_v62  ;;  %210 = vmatmul.f32.vlgmr.msra.gmra.mxu1 %v1484_v20  ;;  %v1927_v62 = vand.u32 4294901760, %v1466_v2 }
  0x4d   :  { %659 = vmatpush.msra.mxu2 %v1919_v21  ;;  %610 = vmatpush.msra.mxu1 %v1262_v8  ;;  %v59_v8 = vld [vmem:[%s1872_s1 + $0x148] sm:$0x3] }
  0x4e   :  { %572 = vmatpush.msra.mxu0 %v1390_v24  ;;  %722 = vmatpush.msra.mxu3 %v1304_v54  ;;  %v1924_v24 = vand.u32 4294901760, %v1412_v35 }
  0x4f   :  { %663 = vmatpush.msra.mxu2 %v1920_v55  ;;  %612 = vmatpush.msra.mxu1 %v1275_v31  ;;  %v1923_v31 = vand.u32 4294901760, %v1406_v22 }
  0x50   :  { %450 = vmatmul.f32.vlgmr.msrb.gmra.mxu2 %v449_v42  ;;  %575 = vmatpush.msra.mxu0 %v1406_v22  ;;  %v1928_v22 = vand.u32 4294901760, %v1482_v48  ;;  %v850_v42 = vsub.f32 %v50_v7, %v1799_v11 }
  0x51   :  { %614 = vmatpush.msra.mxu1 %v1304_v54  ;;  %667 = vmatpush.msra.mxu2 %v1921_v30  ;;  %v58_v54 = vld [vmem:[%s1872_s1 + $0x140] sm:$0xff] }
  0x52   :  { %724 = vmatpush.msra.mxu3 %v1322_v12  ;;  %372 = vmatmul.f32.vlgmr.msrb.gmra.mxu0 %v1484_v20 }
  0x53   :  { %551 = vmatmul.f32.vlgmr.msrb.gmra.mxu3 %v1570_v10  ;;  %578 = vmatpush.msra.mxu0 %v1412_v35 }
  0x54   :  { %616 = vmatpush.msra.mxu1 %v1322_v12  ;;  %671 = vmatpush.msra.mxu2 %v1922_v57  ;;  %v1672_v12 = vand.u32 4294901760, %v58_v54  ;;  %v845_v57 = vand.u32 4294901760, %v1808_v53 }
  0x55   :  { %726 = vmatpush.msra.mxu3 %v1338_v26  ;;  %409 = vmatmul.f32.vlgmr.msrb.gmra.mxu1 %v1484_v20 }
  0x56   :  { %581 = vmatpush.msra.mxu0 %v1427_v45  ;;  %618 = vmatpush.msra.mxu1 %v1338_v26  ;;  %v70_v26 = vsel %vm68_vm0, %v59_v8, 0 }
  0x57   :  { %675 = vmatpush.msra.mxu2 %v1923_v31  ;;  %728 = vmatpush.msra.mxu3 %v1354_v51 }
  0x58   :  { %584 = vmatpush.msra.mxu0 %v1450_v15  ;;  %620 = vmatpush.msra.mxu1 %v1354_v51  ;;  %v1656_v51 = vand.u32 4294901760, %v70_v26  ;;  %v55_v15 = vld [vmem:[%s1872_s1 + $0x128] sm:$0xff] }
  0x59   :  { %679 = vmatpush.msra.mxu2 %v1924_v24  ;;  %730 = vmatpush.msra.mxu3 %v1372_v28  ;;  %v1712_v20 = vand.u32 4294901760, %v55_v15 }
  0x5a   :  { %587 = vmatpush.msra.mxu0 %v1466_v2  ;;  %622 = vmatpush.msra.mxu1 %v1372_v28  ;;  %v57_v28 = vld [vmem:[%s1872_s1 + $0x138] sm:$0xff]  ;;  %v1701_v2 = vsub.f32 %v58_v54, %v1672_v12  ;;  %v846_v54 = vsub.f32 %v1808_v53, %v845_v57 }
  0x5b   :  { %683 = vmatpush.msra.mxu2 %v1925_v38  ;;  %732 = vmatpush.msra.mxu3 %v1382_v6  ;;  %v1685_v35 = vand.u32 4294901760, %v57_v28 }
  0x5c   :  { %590 = vmatpush.msra.mxu0 %v1482_v48  ;;  %624 = vmatpush.msra.mxu1 %v1382_v6  ;;  %v1677_v6 = vsub.f32 %v70_v26, %v1656_v51  ;;  %v54_v48 = vld [vmem:[%s1872_s1 + $0x120] sm:$0xff]  ;;  %v851_v26 = vand.u32 4294901760, %v850_v42 }
  0x5d   :  { %687 = vmatpush.msra.mxu2 %v1926_v56  ;;  %734 = vmatpush.msra.mxu3 %v1395_v23  ;;  %v1715_v13 = vsub.f32 %v57_v28, %v1685_v35 }
  0x5e   :  { %593 = vmatpush.msra.mxu0 %v1500_v29  ;;  %626 = vmatpush.msra.mxu1 %v1395_v23  ;;  %v56_v23 = vld [vmem:[%s1872_s1 + $0x130] sm:$0xff]  ;;  %v852_v28 = vsub.f32 %v850_v42, %v851_v26 }
  0x5f   :  { %691 = vmatpush.msra.mxu2 %v1927_v62  ;;  %736 = vmatpush.msra.mxu3 %v1422_v60  ;;  %v1698_v45 = vand.u32 4294901760, %v56_v23  ;;  %v809_v17 = vand.u32 4294901760, %v1715_v13  ;;  %v847_v62 = vand.u32 4294901760, %v846_v54 }
  0x60   :  { %596 = vmatpush.msra.mxu0 %v1527_v61  ;;  %628 = vmatpush.msra.mxu1 %v1422_v60  ;;  %v17_v60 = vld [vmem:[%s1871_s0 + $0x10] sm:$0xff]  ;;  %v803_v61 = vand.u32 4294901760, %v1701_v2 }
  0x61   :  { %695 = vmatpush.msra.mxu2 %v1928_v22  ;;  %738 = vmatpush.msra.mxu3 %v1437_v16  ;;  %v66_v29 = vsel %vm64_vm1, %v17_v60, 0  ;;  %v1729_v9 = vsub.f32 %v56_v23, %v1698_v45  ;;  %v853_v23 = vand.u32 4294901760, %v852_v28 }
  0x62   :  { %599 = vmatpush.msra.mxu0 %v1540_v27  ;;  %630 = vmatpush.msra.mxu1 %v1437_v16  ;;  %v797_v16 = vand.u32 4294901760, %v1677_v6  ;;  %v52_v27 = vld [vmem:[%s1872_s1 + $0x110] sm:$0xff] }
  0x63   :  { %699 = vmatpush.msra.mxu2 %v528_v47  ;;  %740 = vmatpush.msra.mxu3 %v1452_v18  ;;  %v1725_v47 = vand.u32 4294901760, %v54_v48  ;;  %v1760_v0 = vand.u32 4294901760, %v52_v27 }
  0x64   :  { %602 = vmatpush.msra.mxu0 %v1551_v36  ;;  %632 = vmatpush.msra.mxu1 %v1452_v18  ;;  %v53_v18 = vld [vmem:[%s1872_s1 + $0x118] sm:$0xff]  ;;  %v804_v36 = vsub.f32 %v1701_v2, %v803_v61 }
  0x65   :  { %703 = vmatpush.msra.mxu2 %v534_v4  ;;  %742 = vmatpush.msra.mxu3 %v1468_v19  ;;  %v1739_v4 = vand.u32 4294901760, %v66_v29  ;;  %v1744_v14 = vand.u32 4294901760, %v53_v18  ;;  %v1764_v3 = vsub.f32 %v54_v48, %v1725_v47  ;;  %v1794_v34 = vsub.f32 %v52_v27, %v1760_v0 }
  0x66   :  { %605 = vmatmul.f32.vlgmr.msra.gmra.mxu0 %v1587_v43  ;;  %634 = vmatpush.msra.mxu1 %v1468_v19  ;;  %v798_v19 = vsub.f32 %v1677_v6, %v797_v16 }
  0x67   :  { %761 = vmatpush.msrb.mxu0 %v1656_v51  ;;  %707 = vmatpush.msra.mxu2 %v540_v5  ;;  %v815_v5 = vand.u32 4294901760, %v1729_v9  ;;  %v1769_v1 = vsub.f32 %v66_v29, %v1739_v4  ;;  %v827_v39 = vand.u32 4294901760, %v1764_v3  ;;  %v839_v63 = vand.u32 4294901760, %v1794_v34 }
  0x68   :  { %744 = vmatpush.msra.mxu3 %v1497_v37  ;;  %636 = vmatpush.msra.mxu1 %v1497_v37  ;;  %v1748_v37 = vsub.f32 %v55_v15, %v1712_v20  ;;  %v799_v25 = vand.u32 4294901760, %v798_v19 }
  0x69   :  { %763 = vmatpush.msrb.mxu0 %v1672_v12  ;;  %711 = vmatpush.msra.mxu2 %v546_v46  ;;  %v810_v46 = vsub.f32 %v1715_v13, %v809_v17  ;;  %v816_v59 = vsub.f32 %v1729_v9, %v815_v5  ;;  %v840_v31 = vsub.f32 %v1794_v34, %v839_v63 }
  0x6a   :  { %746 = vmatpush.msra.mxu3 %v1516_v40  ;;  %713 = vmatmul.f32.vlgmr.msra.gmra.mxu2 %v1570_v10  ;;  %v821_v33 = vand.u32 4294901760, %v1748_v37 }
  0x6b   :  { %765 = vmatpush.msrb.mxu0 %v1685_v35  ;;  %868 = vmatpush.msrb.mxu2 %v1677_v6  ;;  %v811_v44 = vand.u32 4294901760, %v810_v46  ;;  %v817_v43 = vand.u32 4294901760, %v816_v59  ;;  %v841_v56 = vand.u32 4294901760, %v840_v31 }
  0x6c   :  { %638 = vmatpush.msra.mxu1 %v1516_v40  ;;  %748 = vmatpush.msra.mxu3 %v1529_v32  ;;  %v1780_v40 = vsub.f32 %v53_v18, %v1744_v14  ;;  %v822_v49 = vsub.f32 %v1748_v37, %v821_v33 }
  0x6d   :  { %750 = vmatmul.f32.vlgmr.msra.gmra.mxu3 %v1570_v10  ;;  %767 = vmatpush.msrb.mxu0 %v1698_v45  ;;  %v805_v10 = vand.u32 4294901760, %v804_v36 }
  0x6e   :  { %871 = vmatpush.msrb.mxu2 %v1701_v2  ;;  %909 = vmatpush.msrb.mxu3 %v1656_v51  ;;  %v833_v50 = vand.u32 4294901760, %v1780_v40  ;;  %v823_v55 = vand.u32 4294901760, %v822_v49 }
  0x6f   :  { %640 = vmatpush.msra.mxu1 %v1529_v32  ;;  %769 = vmatpush.msrb.mxu0 %v1712_v20  ;;  %v782_v32 = vand.u32 4294901760, %v1769_v1 }
  0x70   :  { %644 = vmatmul.f32.vlgmr.msra.gmra.mxu1 %v447_v52  ;;  %874 = vmatpush.msrb.mxu2 %v1715_v13  ;;  %v828_v52 = vsub.f32 %v1764_v3, %v827_v39  ;;  %v834_v30 = vsub.f32 %v1780_v40, %v833_v50 }
  0x71   :  { %800 = vmatpush.msrb.mxu1 %v799_v25  ;;  %911 = vmatpush.msrb.mxu3 %v1672_v12  ;;  %v783_v21 = vsub.f32 %v1769_v1, %v782_v32 }
  0x72   :  { %771 = vmatpush.msrb.mxu0 %v1725_v47  ;;  %877 = vmatpush.msrb.mxu2 %v1729_v9  ;;  %v829_v8 = vand.u32 4294901760, %v828_v52  ;;  %v835_v38 = vand.u32 4294901760, %v834_v30 }
  0x73   :  { %806 = vmatpush.msrb.mxu1 %v805_v10  ;;  %913 = vmatpush.msrb.mxu3 %v1685_v35  ;;  %v784_v24 = vand.u32 4294901760, %v783_v21 }
  0x74   :  { %773 = vmatpush.msrb.mxu0 %v1744_v14  ;;  %880 = vmatpush.msrb.mxu2 %v1748_v37 }
  0x75   :  { %812 = vmatpush.msrb.mxu1 %v811_v44  ;;  %915 = vmatpush.msrb.mxu3 %v1698_v45 }
  0x76   :  { %775 = vmatpush.msrb.mxu0 %v1760_v0  ;;  %883 = vmatpush.msrb.mxu2 %v1764_v3 }
  0x77   :  { %818 = vmatpush.msrb.mxu1 %v817_v43  ;;  %917 = vmatpush.msrb.mxu3 %v1712_v20 }
  0x78   :  { %777 = vmatpush.msrb.mxu0 %v1776_v41  ;;  %886 = vmatpush.msrb.mxu2 %v1780_v40 }
  0x79   :  { %824 = vmatpush.msrb.mxu1 %v823_v55  ;;  %919 = vmatpush.msrb.mxu3 %v1725_v47 }
  0x7a   :  { %779 = vmatpush.msrb.mxu0 %v1799_v11  ;;  %889 = vmatpush.msrb.mxu2 %v1794_v34 }
  0x7b   :  { %830 = vmatpush.msrb.mxu1 %v829_v8  ;;  %921 = vmatpush.msrb.mxu3 %v1744_v14 }
  0x7c   :  { %785 = vmatmul.f32.vlgmr.msrb.gmra.mxu0 %v784_v24  ;;  %892 = vmatpush.msrb.mxu2 %v1808_v53 }
  0x7d   :  { %944 = vmatpush.msra.mxu0 %v797_v16  ;;  %836 = vmatpush.msrb.mxu1 %v835_v38 }
  0x7e   :  { %923 = vmatpush.msrb.mxu3 %v1760_v0  ;;  %895 = vmatpush.msrb.mxu2 %v850_v42 }
  0x7f   :  { %948 = vmatpush.msra.mxu0 %v803_v61  ;;  %842 = vmatpush.msrb.mxu1 %v841_v56 }
  0x80   :  { %925 = vmatpush.msrb.mxu3 %v1776_v41  ;;  %898 = vmatmul.f32.vlgmr.msrb.gmra.mxu2 %v1769_v1 }
  0x81   :  { %952 = vmatpush.msra.mxu0 %v809_v17  ;;  %848 = vmatpush.msrb.mxu1 %v847_v62 }
  0x82   :  { %927 = vmatpush.msrb.mxu3 %v1799_v11 }
  0x83   :  { %931 = vmatmul.f32.vlgmr.msrb.gmra.mxu3 %v782_v32  ;;  %956 = vmatpush.msra.mxu0 %v815_v5 }
  0x84   :  { %854 = vmatpush.msrb.mxu1 %v853_v23 }
  0x85   :  { %856 = vmatmul.f32.vlgmr.msrb.gmra.mxu1 %v1739_v4  ;;  %960 = vmatpush.msra.mxu0 %v821_v33 }
  0x86   :  { %993 = vmatpush.msra.mxu1 %v1656_v51  ;;  %v1036_v51 = vld [vmem:[%s1873_s2] ss:$0 sm:$0xff]  ;;  %s1063_s2 = smov [#allocation2]  }
  0x87   :  { %964 = vmatpush.msra.mxu0 %v827_v39  ;;  %s1024_s21 = sshll.u32 %s1063_s2, 4  ;;  %s1025_s21 = int_to_ptr.vmem [resolvable:$true] %s1024_s21 }
  0x88   :  { %995 = vmatpush.msra.mxu1 %v1672_v12 }
  0x89   :  { %968 = vmatpush.msra.mxu0 %v833_v50 }
  0x8a   :  { %997 = vmatpush.msra.mxu1 %v1685_v35 }
  0x8b   :  { %972 = vmatpush.msra.mxu0 %v839_v63 }
  0x8c   :  { %999 = vmatpush.msra.mxu1 %v1698_v45 }
  0x8d   :  { %976 = vmatpush.msra.mxu0 %v845_v57 }
  0x8e   :  { %1001 = vmatpush.msra.mxu1 %v1712_v20 }
  0x8f   :  { %980 = vmatpush.msra.mxu0 %v851_v26 }
  0x90   :  { %1003 = vmatpush.msra.mxu1 %v1725_v47  ;;  %982 = vmatmul.f32.vlgmr.msra.gmra.mxu0 %v1739_v4 }
  0x92   :  { %1005 = vmatpush.msra.mxu1 %v1744_v14 }
  0x94   :  { %1007 = vmatpush.msra.mxu1 %v1760_v0 }
  0x96   :  { %1009 = vmatpush.msra.mxu1 %v1776_v41 }
  0x98   :  { %1011 = vmatpush.msra.mxu1 %v1799_v11 }
  0x99   :  { %1013 = vmatmul.f32.vlgmr.msra.gmra.mxu1 %v1739_v4 }
  0xbc   :  { %v110_v12 = vpop.f32.mrf.mxu0 }
  0xbd   :  { %v111_v6 = vadd.f32 %v1036_v51, %v110_v12 }
  0xc9   :  { %v211_v22 = vpop.f32.mrf.mxu1 }
  0xca   :  { %v212_v35 = vadd.f32 %v211_v22, %v111_v6  ;;  %v265_v15 = vpop.f32.mrf.mxu2  ;;  %v304_v45 = vpop.f32.mrf.mxu3 }
  0xcc   :  { %v266_v60 = vadd.f32 %v265_v15, %v212_v35 }
  0xce   :  { %v305_v2 = vadd.f32 %v304_v45, %v266_v60 }
  0xcf   :  { %v373_v16 = vpop.f32.mrf.mxu0 }
  0xd0   :  { %v374_v48 = vadd.f32 %v373_v16, %v305_v2 }
  0xd2   :  { %v410_v20 = vpop.f32.mrf.mxu1 }
  0xd3   :  { %v411_v13 = vadd.f32 %v410_v20, %v374_v48  ;;  %v451_v29 = vpop.f32.mrf.mxu2 }
  0xd5   :  { %v452_v18 = vadd.f32 %v451_v29, %v411_v13 }
  0xd6   :  { %v552_v47 = vpop.f32.mrf.mxu3 }
  0xd7   :  { %v553_v9 = vadd.f32 %v552_v47, %v452_v18 }
  0xe3   :  { %v606_v61 = vpop.f32.mrf.mxu0 }
  0xe4   :  { %v607_v27 = vadd.f32 %v606_v61, %v553_v9 }
  0xed   :  { %v645_v19 = vpop.f32.mrf.mxu1  ;;  %v714_v14 = vpop.f32.mrf.mxu2 }
  0xee   :  { %v646_v4 = vadd.f32 %v645_v19, %v607_v27 }
  0xf0   :  { %v715_v17 = vadd.f32 %v714_v14, %v646_v4  ;;  %v751_v37 = vpop.f32.mrf.mxu3 }
  0xf2   :  { %v752_v36 = vadd.f32 %v751_v37, %v715_v17 }
  0xf9   :  { %v786_v58 = vpop.f32.mrf.mxu0 }
  0xfa   :  { %v787_v5 = vadd.f32 %v786_v58, %v752_v36 }
 0x102   :  { %v857_v0 = vpop.f32.mrf.mxu1 }
 0x103   :  { %v858_v3 = vadd.f32 %v857_v0, %v787_v5  ;;  %v899_v25 = vpop.f32.mrf.mxu2 }
 0x105   :  { %v900_v1 = vadd.f32 %v899_v25, %v858_v3 }
 0x106   :  { %v932_v46 = vpop.f32.mrf.mxu3 }
 0x107   :  { %v933_v33 = vadd.f32 %v932_v46, %v900_v1 }
 0x10d   :  { %v983_v41 = vpop.f32.mrf.mxu0 }
 0x10e   :  { %v984_v40 = vadd.f32 %v983_v41, %v933_v33 }
 0x116   :  { %v1014_v7 = vpop.f32.mrf.mxu1 }
 0x117   :  { %v1015_v10 = vadd.f32 %v1014_v7, %v984_v40 }
 0x119   :  { %1018 = vst.msk [vmem:[#allocation2] sm:$0xff] %vm1017_vm2, %v1015_v10 }
 0x11a   :  { %1029 = dma.vmem_to_hbm [thread:$0]  %s1025_s21, 128, %s1027_s24, [#allocation3]  }
 0x11b   :  { %1061 = dma.done.wait [#allocation3], 128  }
 0x11c   :  { %1062 = vsyncadd [#allocation3], 4294967168 }
 0x11d   :  { %1034 = vsyncpa [#allocation3], 1 }

</bundles_post_ra>
